<compile_context>
chip_gen: v5e
topology: v5e:2x2
jax: 0.10.0
libtpu: 0.0.40
codegen_flags: <defaults>
</compile_context>

<pallas_src>
import math

import jax
import jax.numpy as jnp
from jax.experimental import pallas as pl
from jax.experimental.pallas import tpu as pltpu


def _round_up(a: int, b: int) -> int:
    return (a + b - 1) // b * b


def _sublane_multiple(dtype) -> int:
    # f32 -> 8 sublanes, bf16 -> 16, int8/fp8 -> 32 (packed-sublane alignment).
    return max(8, 32 // jnp.dtype(dtype).itemsize)


def _make_kernel(alpha: float, cast_lhs_bf16: bool):
    alpha_is_one = alpha == 1.0
    inv_alpha = 1.0 / alpha
    exponent = (alpha + 1.0) / 2.0

    def clusterling_kernel(x_ref, wt_ref, w_off_ref, o_ref):
        x = x_ref[...]            # (TILE_N, D)
        wt = wt_ref[...]          # (D, K_pad), pre-scaled by -2/alpha
        w_off = w_off_ref[...]    # (1, K_pad) f32: ||w||^2/alpha + 1 (1e30 on pad cols)

        # MXU cross term: xw = -2 x.w / alpha  (f32 accumulation).
        lhs = x.astype(jnp.bfloat16) if cast_lhs_bf16 else x
        xw = jnp.dot(lhs, wt, preferred_element_type=jnp.float32)   # (TILE_N, K_pad)

        x32 = x.astype(jnp.float32)
        x_sq = jnp.sum(x32 * x32, axis=1, keepdims=True)            # (TILE_N, 1)
        if not alpha_is_one:
            x_sq = x_sq * inv_alpha

        # base = max(1 + d/alpha, 1); the max also guards rounding-negative d.
        base = jnp.maximum(x_sq + w_off + xw, 1.0)

        if alpha_is_one:
            # (alpha+1)/2 == 1: q = 1/base.  EUP vrcp + one Newton step (~2^-24 rel).
            r = pl.reciprocal(base, approx=True)
            q = r * (2.0 - base * r)
        else:
            # base^(-(alpha+1)/2) == exp(-exponent * log(base)): one log + one exp.
            q = jnp.exp(-exponent * jnp.log(base))

        denom = jnp.sum(q, axis=1, keepdims=True)                   # (TILE_N, 1)
        q = q * pl.reciprocal(denom, approx=False)                  # exact row normalize
        o_ref[...] = q.astype(o_ref.dtype)

    return clusterling_kernel


def clusterling_forward(
    x,
    weight,
    alpha: float = 1.0,
    *,
    out_dtype=None,      # e.g. jnp.bfloat16 to halve output writeback on v5e/v6e
    mxu_bf16: bool = False,  # opt-in bf16 cross-term (only sensible for large D)
    tile_n_max: int = 1024,
):
    """x: (N, in_features), weight: (out_features, in_features) -> (N, out_features)."""
    n, d = x.shape
    k, d2 = weight.shape
    assert d == d2, "feature dims must match"
    alpha = float(alpha)
    out_dtype = jnp.dtype(x.dtype if out_dtype is None else out_dtype)

    # Lane-dense / MXU-friendly padding of the cluster axis.
    k_pad = _round_up(max(k, 1), 128)
    wt_dtype = jnp.dtype(jnp.bfloat16) if mxu_bf16 else jnp.dtype(weight.dtype)

    # ---- generation-aware VMEM budgeting ---------------------------------
    try:
        vmem_cap = int(pltpu.get_tpu_info().vmem_capacity_bytes)
    except Exception:
        vmem_cap = 64 << 20               # conservative (v7x per-TC capacity)
    vmem_budget = int(0.55 * vmem_cap)    # budget for kernel buffers
    vmem_limit = int(0.80 * vmem_cap)     # scoped limit handed to Mosaic

    isz_x = jnp.dtype(x.dtype).itemsize
    isz_o = out_dtype.itemsize
    isz_w = wt_dtype.itemsize

    # resident (single-buffered) blocks + per-row (double-buffered + f32 temps)
    resident_bytes = d * k_pad * isz_w + 8 * k_pad * 4
    per_row_bytes = 2 * d * isz_x + 2 * k_pad * isz_o + 3 * k_pad * 4
    # TODO(synk): add a K grid axis (with per-row renormalization) if the
    # resident centroids alone exceed the VMEM budget (very large K*D).
    tile_fit = max(1, (vmem_budget - resident_bytes) // per_row_bytes)

    sub = max(_sublane_multiple(x.dtype), _sublane_multiple(out_dtype))
    n_sub = _round_up(max(n, 1), sub)
    tile_n = min(tile_n_max, tile_fit, n_sub)
    tile_n = max(sub, tile_n // sub * sub)
    # Prefer >=2 grid steps so the "parallel" axis can shard rows over both
    # v7x TensorCores.
    if tile_n >= n_sub and n_sub >= 2 * sub:
        tile_n = _round_up((n_sub + 1) // 2, sub)
    n_pad = _round_up(n_sub, tile_n)

    # ---- hoisted, call-invariant operands ---------------------------------
    x_p = x if n_pad == n else jnp.pad(x, ((0, n_pad - n), (0, 0)))
    w_p = weight if k_pad == k else jnp.pad(weight, ((0, k_pad - k), (0, 0)))
    w32 = w_p.astype(jnp.float32)

    # wt = -2/alpha * W^T  (cross term arrives already scaled from the MXU).
    wt = (jnp.transpose(w32) * jnp.float32(-2.0 / alpha)).astype(wt_dtype)
    # w_off = ||w||^2/alpha + 1, with a huge finite value on padded columns so
    # q evaluates to ~0 there (replaces the in-kernel iota/where mask).
    w_off = jnp.sum(w32 * w32, axis=1) * jnp.float32(1.0 / alpha) + jnp.float32(1.0)
    if k_pad != k:
        w_off = w_off.at[k:].set(jnp.float32(1e30))
    w_off = w_off[None, :]                                      # (1, K_pad) f32

    kernel = _make_kernel(alpha, cast_lhs_bf16=(mxu_bf16 and x.dtype != jnp.bfloat16))

    cost = pl.CostEstimate(
        flops=2 * n_pad * k_pad * d + 8 * n_pad * k_pad,
        bytes_accessed=n_pad * d * isz_x + d * k_pad * isz_w + k_pad * 4
        + n_pad * k_pad * isz_o,
        transcendentals=n_pad * k_pad * (1 if alpha == 1.0 else 2),
    )

    def build(single_buffer_resident: bool):
        res_kw = {"pipeline_mode": pl.Buffered(1)} if single_buffer_resident else {}
        return pl.pallas_call(
            kernel,
            out_shape=jax.ShapeDtypeStruct((n_pad, k_pad), out_dtype),
            grid_spec=pltpu.PrefetchScalarGridSpec(
                num_scalar_prefetch=0,
                grid=(n_pad // tile_n,),
                in_specs=[
                    pl.BlockSpec((tile_n, d), lambda i: (i, 0)),           # x rows
                    pl.BlockSpec((d, k_pad), lambda i: (0, 0), **res_kw),  # centroids
                    pl.BlockSpec((1, k_pad), lambda i: (0, 0), **res_kw),  # w_off
                ],
                out_specs=pl.BlockSpec((tile_n, k_pad), lambda i: (i, 0)),
            ),
            compiler_params=pltpu.CompilerParams(
                dimension_semantics=("parallel",),
                vmem_limit_bytes=vmem_limit,
            ),
            cost_estimate=cost,
        )

    try:
        out = build(True)(x_p, wt, w_off)
    except Exception:
        # pipeline_mode=pl.Buffered(1) not supported by this jax version:
        # fall back to default double-buffering of the resident blocks.
        out = build(False)(x_p, wt, w_off)

    return out[:n, :k]


def xavier_uniform(key, out_features, in_features, dtype=jnp.float32):
    # Matches torch.nn.init.xavier_uniform_ (gain=1.0).
    bound = math.sqrt(6.0 / (in_features + out_features))
    return jax.random.uniform(
        key, (out_features, in_features), dtype=dtype, minval=-bound, maxval=bound
    )


def clusterling_reference(x, weight, alpha: float = 1.0):
    # Pure-JAX reference mirroring the PyTorch forward literally.
    d = jnp.sum((x[:, None, :] - weight[None, :, :]) ** 2, axis=2)
    q = 1.0 + d / alpha
    q = 1.0 / q
    q = q ** ((alpha + 1.0) / 2.0)
    q = (q.T / jnp.sum(q, axis=1)).T
    return q


if __name__ == "__main__":
    key = jax.random.PRNGKey(0)
    k1, k2, k3, k4 = jax.random.split(key, 4)

    # Case 1: module defaults (in=10, out=10, alpha=1.0) -> reciprocal fast path.
    x1 = jax.random.normal(k1, (8, 10), dtype=jnp.float32)
    w1 = xavier_uniform(k2, 10, 10)
    o1 = jax.block_until_ready(clusterling_forward(x1, w1, alpha=1.0))
    r1 = clusterling_reference(x1, w1, alpha=1.0)
    assert o1.shape == (8, 10)
    assert jnp.allclose(o1, r1, atol=1e-5, rtol=1e-5), "alpha=1 mismatch vs reference"
    assert jnp.allclose(jnp.sum(o1, axis=1), 1.0, atol=1e-5), "rows must sum to 1"

    # Case 2: general alpha, padded cluster axis, multi-step row grid.
    x2 = jax.random.normal(k3, (16, 12), dtype=jnp.float32)
    w2 = xavier_uniform(k4, 20, 12)
    o2 = jax.block_until_ready(clusterling_forward(x2, w2, alpha=2.0))
    r2 = clusterling_reference(x2, w2, alpha=2.0)
    assert o2.shape == (16, 20)
    assert jnp.allclose(o2, r2, atol=1e-5, rtol=1e-5), "alpha=2 mismatch vs reference"
    assert jnp.allclose(jnp.sum(o2, axis=1), 1.0, atol=1e-5), "rows must sum to 1"

    print("KERNEL_OK")
</pallas_src>

<mosaic_0001>
module attributes {stable_mosaic.version = 11 : i64} {
  func.func @clusterling_kernel(%arg0: i32, %arg1: memref<8x10xf32, #tpu.memory_space<vmem>>, %arg2: memref<10x128xf32, #tpu.memory_space<vmem>>, %arg3: memref<1x128xf32, #tpu.memory_space<vmem>>, %arg4: memref<8x128xf32, #tpu.memory_space<vmem>>) attributes {dimension_semantics = [#tpu.dimension_semantics<parallel>], iteration_bounds = array<i64: 1>, scalar_prefetch = 0 : i64, scratch_operands = 0 : i64, tpu.core_type = #tpu.core_type<tc>, window_params = [{transform_indices = @transform_0, window_bounds = array<i64: 8, 10>}, {pipeline_mode = #tpu.pipeline_mode<synchronous>, transform_indices = @transform_1, window_bounds = array<i64: 10, 128>}, {pipeline_mode = #tpu.pipeline_mode<synchronous>, transform_indices = @transform_2, window_bounds = array<i64: 1, 128>}, {transform_indices = @transform_3, window_bounds = array<i64: 8, 128>}]} {
    %c0 = arith.constant 0 : index
    %c0_0 = arith.constant 0 : index
    %0 = vector.load %arg1[%c0, %c0_0] : memref<8x10xf32, #tpu.memory_space<vmem>>, vector<8x10xf32>
    %c0_1 = arith.constant 0 : index
    %c0_2 = arith.constant 0 : index
    %1 = vector.load %arg2[%c0_1, %c0_2] : memref<10x128xf32, #tpu.memory_space<vmem>>, vector<10x128xf32>
    %c0_3 = arith.constant 0 : index
    %c0_4 = arith.constant 0 : index
    %2 = vector.load %arg3[%c0_3, %c0_4] : memref<1x128xf32, #tpu.memory_space<vmem>>, vector<1x128xf32>
    %cst = arith.constant dense<0.000000e+00> : vector<8x128xf32>
    %3 = tpu.matmul %0, %1, %cst {dimension_numbers = #tpu.dot_dimension_numbers<[1], [0], [0], [1], [0, 0, 1, 1], [], []>} : vector<8x10xf32>, vector<10x128xf32>, vector<8x128xf32> -> vector<8x128xf32>
    %4 = arith.mulf %0, %0 : vector<8x10xf32>
    %cst_5 = arith.constant dense<0.000000e+00> : vector<8xf32>
    %5 = vector.multi_reduction <add>, %4, %cst_5 [1] : vector<8x10xf32> to vector<8xf32>
    %6 = vector.shape_cast %5 : vector<8xf32> to vector<8x1xf32>
    %7 = vector.broadcast %6 : vector<8x1xf32> to vector<8x128xf32>
    %8 = vector.broadcast %2 : vector<1x128xf32> to vector<8x128xf32>
    %9 = arith.addf %7, %8 : vector<8x128xf32>
    %10 = arith.addf %9, %3 : vector<8x128xf32>
    %cst_6 = arith.constant 1.000000e+00 : f32
    %11 = vector.broadcast %cst_6 : f32 to vector<8x128xf32>
    %12 = arith.maximumf %10, %11 : vector<8x128xf32>
    %13 = tpu.reciprocal %12 {approx = true} : vector<8x128xf32> -> vector<8x128xf32>
    %14 = arith.mulf %12, %13 : vector<8x128xf32>
    %cst_7 = arith.constant 2.000000e+00 : f32
    %15 = vector.broadcast %cst_7 : f32 to vector<8x128xf32>
    %16 = arith.subf %15, %14 : vector<8x128xf32>
    %17 = arith.mulf %13, %16 : vector<8x128xf32>
    %cst_8 = arith.constant dense<0.000000e+00> : vector<8xf32>
    %18 = vector.multi_reduction <add>, %17, %cst_8 [1] : vector<8x128xf32> to vector<8xf32>
    %19 = vector.shape_cast %18 : vector<8xf32> to vector<8x1xf32>
    %20 = tpu.reciprocal %19 : vector<8x1xf32> -> vector<8x1xf32>
    %21 = vector.broadcast %20 : vector<8x1xf32> to vector<8x128xf32>
    %22 = arith.mulf %17, %21 : vector<8x128xf32>
    %c0_9 = arith.constant 0 : index
    %c0_10 = arith.constant 0 : index
    %23 = vector.load %arg4[%c0_9, %c0_10] : memref<8x128xf32, #tpu.memory_space<vmem>>, vector<8x128xf32>
    tpu.vector_store %arg4[%c0_9, %c0_10], %22 {strides = array<i32>} : memref<8x128xf32, #tpu.memory_space<vmem>>, vector<8x128xf32>,
    return
  }
  func.func @transform_0(%arg0: i32) -> (i32, i32) {
    %c0_i32 = arith.constant 0 : i32
    %c0_i32_0 = arith.constant 0 : i32
    return %arg0, %c0_i32 : i32, i32
  }
  func.func @transform_1(%arg0: i32) -> (i32, i32) {
    %c0_i32 = arith.constant 0 : i32
    %c0_i32_0 = arith.constant 0 : i32
    %c0_i32_1 = arith.constant 0 : i32
    return %c0_i32, %c0_i32_0 : i32, i32
  }
  func.func @transform_2(%arg0: i32) -> (i32, i32) {
    %c0_i32 = arith.constant 0 : i32
    %c0_i32_0 = arith.constant 0 : i32
    %c0_i32_1 = arith.constant 0 : i32
    return %c0_i32, %c0_i32_0 : i32, i32
  }
  func.func @transform_3(%arg0: i32) -> (i32, i32) {
    %c0_i32 = arith.constant 0 : i32
    %c0_i32_0 = arith.constant 0 : i32
    return %arg0, %c0_i32 : i32, i32
  }
}

module attributes {stable_mosaic.version = 11 : i64} {
  func.func @clusterling_kernel(%arg0: i32, %arg1: memref<8x10xf32, #tpu.memory_space<vmem>>, %arg2: memref<10x128xf32, #tpu.memory_space<vmem>>, %arg3: memref<1x128xf32, #tpu.memory_space<vmem>>, %arg4: memref<8x128xf32, #tpu.memory_space<vmem>>) attributes {dimension_semantics = [#tpu.dimension_semantics<parallel>], iteration_bounds = array<i64: 1>, scalar_prefetch = 0 : i64, scratch_operands = 0 : i64, tpu.core_type = #tpu.core_type<tc>, window_params = [{transform_indices = @transform_0, window_bounds = array<i64: 8, 10>}, {pipeline_mode = #tpu.pipeline_mode<synchronous>, transform_indices = @transform_1, window_bounds = array<i64: 10, 128>}, {pipeline_mode = #tpu.pipeline_mode<synchronous>, transform_indices = @transform_2, window_bounds = array<i64: 1, 128>}, {transform_indices = @transform_3, window_bounds = array<i64: 8, 128>}]} {
    %c0 = arith.constant 0 : index
    %c0_0 = arith.constant 0 : index
    %0 = vector.load %arg1[%c0, %c0_0] : memref<8x10xf32, #tpu.memory_space<vmem>>, vector<8x10xf32>
    %c0_1 = arith.constant 0 : index
    %c0_2 = arith.constant 0 : index
    %1 = vector.load %arg2[%c0_1, %c0_2] : memref<10x128xf32, #tpu.memory_space<vmem>>, vector<10x128xf32>
    %c0_3 = arith.constant 0 : index
    %c0_4 = arith.constant 0 : index
    %2 = vector.load %arg3[%c0_3, %c0_4] : memref<1x128xf32, #tpu.memory_space<vmem>>, vector<1x128xf32>
    %cst = arith.constant dense<0.000000e+00> : vector<8x128xf32>
    %3 = tpu.matmul %0, %1, %cst {dimension_numbers = #tpu.dot_dimension_numbers<[1], [0], [0], [1], [0, 0, 1, 1], [], []>} : vector<8x10xf32>, vector<10x128xf32>, vector<8x128xf32> -> vector<8x128xf32>
    %4 = arith.mulf %0, %0 : vector<8x10xf32>
    %cst_5 = arith.constant dense<0.000000e+00> : vector<8xf32>
    %5 = vector.multi_reduction <add>, %4, %cst_5 [1] : vector<8x10xf32> to vector<8xf32>
    %6 = vector.shape_cast %5 : vector<8xf32> to vector<8x1xf32>
    %7 = vector.broadcast %6 : vector<8x1xf32> to vector<8x128xf32>
    %8 = vector.broadcast %2 : vector<1x128xf32> to vector<8x128xf32>
    %9 = arith.addf %7, %8 : vector<8x128xf32>
    %10 = arith.addf %9, %3 : vector<8x128xf32>
    %cst_6 = arith.constant 1.000000e+00 : f32
    %11 = vector.broadcast %cst_6 : f32 to vector<8x128xf32>
    %12 = arith.maximumf %10, %11 : vector<8x128xf32>
    %13 = tpu.reciprocal %12 {approx = true} : vector<8x128xf32> -> vector<8x128xf32>
    %14 = arith.mulf %12, %13 : vector<8x128xf32>
    %cst_7 = arith.constant 2.000000e+00 : f32
    %15 = vector.broadcast %cst_7 : f32 to vector<8x128xf32>
    %16 = arith.subf %15, %14 : vector<8x128xf32>
    %17 = arith.mulf %13, %16 : vector<8x128xf32>
    %cst_8 = arith.constant dense<0.000000e+00> : vector<8xf32>
    %18 = vector.multi_reduction <add>, %17, %cst_8 [1] : vector<8x128xf32> to vector<8xf32>
    %19 = vector.shape_cast %18 : vector<8xf32> to vector<8x1xf32>
    %20 = tpu.reciprocal %19 : vector<8x1xf32> -> vector<8x1xf32>
    %21 = vector.broadcast %20 : vector<8x1xf32> to vector<8x128xf32>
    %22 = arith.mulf %17, %21 : vector<8x128xf32>
    %c0_9 = arith.constant 0 : index
    %c0_10 = arith.constant 0 : index
    %23 = vector.load %arg4[%c0_9, %c0_10] : memref<8x128xf32, #tpu.memory_space<vmem>>, vector<8x128xf32>
    tpu.vector_store %arg4[%c0_9, %c0_10], %22 {strides = array<i32>} : memref<8x128xf32, #tpu.memory_space<vmem>>, vector<8x128xf32>,
    return
  }
  func.func @transform_0(%arg0: i32) -> (i32, i32) {
    %c0_i32 = arith.constant 0 : i32
    %c0_i32_0 = arith.constant 0 : i32
    return %arg0, %c0_i32 : i32, i32
  }
  func.func @transform_1(%arg0: i32) -> (i32, i32) {
    %c0_i32 = arith.constant 0 : i32
    %c0_i32_0 = arith.constant 0 : i32
    %c0_i32_1 = arith.constant 0 : i32
    return %c0_i32, %c0_i32_0 : i32, i32
  }
  func.func @transform_2(%arg0: i32) -> (i32, i32) {
    %c0_i32 = arith.constant 0 : i32
    %c0_i32_0 = arith.constant 0 : i32
    %c0_i32_1 = arith.constant 0 : i32
    return %c0_i32, %c0_i32_0 : i32, i32
  }
  func.func @transform_3(%arg0: i32) -> (i32, i32) {
    %c0_i32 = arith.constant 0 : i32
    %c0_i32_0 = arith.constant 0 : i32
    return %arg0, %c0_i32 : i32, i32
  }
}

</mosaic_0001>

<bundles_post_ra>
// kernel: tpu_custom_call.1
= control target key start
LH: loop header
LB: loop body
LE: loop exit
PB: predicated region body
PF: predicated region fallthrough
CT: control target
= control target key end

     0   :  { %8 = vsyncpa [#allocation3], 0  ;;  %s254_s0 = inlined_call_operand.hbm [shape: f32[8,10], index: 0, kind: input, shape index: {}]   ;;  %s255_s1 = inlined_call_operand.hbm [shape: f32[10,128], index: 1, kind: input, shape index: {}]   ;;  %s256_s2 = inlined_call_operand.vmem [shape: f32[1,128], index: 2, kind: input, shape index: {}]   ;;  %s257_s3 = inlined_call_operand.hbm [shape: f32[8,128], index: 3, kind: output, shape index: {}]  }
   0x1   :  { %9 = vsyncpa [#allocation6], 0 }
   0x2   :  { %10 = vsyncpa [#allocation4], 0  ;;  %s16_s14 = sshll.u32 %s254_s0, 4  ;;  %s217_s15 = smov [#allocation2]   ;;  %s17_s14 = int_to_ptr.hbm [resolvable:$true] %s16_s14 }
   0x3   :  { %s18_s16 = sshll.u32 %s217_s15, 4  ;;  %s26_s19 = sshll.u32 %s255_s1, 4  ;;  %s19_s16 = int_to_ptr.vmem [resolvable:$true] %s18_s16  ;;  %s27_s19 = int_to_ptr.hbm [resolvable:$true] %s26_s19 }
   0x4   :  { %21 = dma.hbm_to_vmem [thread:$0]  %s17_s14, 128, %s19_s16, [#allocation3]  }
   0x5   :  { %s218_s20 = smov [#allocation5]   ;;  %s219_s22 = smov 128  }
   0x6   :  { %s28_s21 = sshll.u32 %s218_s20, 4  ;;  %s220_s23 = smov 8   ;;  %s29_s21 = int_to_ptr.vmem [resolvable:$true] %s28_s21 }
   0x7   :  { %34 = dma.hbm_to_vmem [thread:$0]  %s27_s19, 256, %s29_s21, [#allocation6], %s219_s22, %s219_s22, %s220_s23  }
   0x8   :  { %211 = dma.done.wait [#allocation3], 128  }
   0x9   :  { %212 = vsyncadd [#allocation3], 4294967168 }
   0xa   :  { %213 = dma.done.wait [#allocation6], 256  }
   0xb   :  { %214 = vsyncadd [#allocation6], 4294967040  ;;  %vm53_vm0 = vcmask 1041408   ;;  %v47_v0 = vld [vmem:[#allocation5 + $0x8] sm:$0x3]  ;;  %v46_v1 = vld [vmem:[#allocation5] sm:$0xff] }
   0xc   :  { %v45_v2 = vld [vmem:[#allocation2] sm:$0xff]  ;;  %127 = vmatpush.msk.msra.mxu0 %vm53_vm0, %v47_v0  ;;  %vm49_vm1 = vcmask 80896   ;;  %s116_s27 = sshll.u32 %s257_s3, 4  ;;  %s117_s27 = int_to_ptr.hbm [resolvable:$true] %s116_s27 }
   0xd   :  { %v77_v3 = vmul.f32 %v45_v2, %v45_v2  ;;  %v134_v5 = vld [vmem:[%s256_s2] ss:$0 sm:$0xff]  ;;  %s221_s2 = smov [#allocation7]  }
   0xe   :  { %72 = vmatpush.msra.mxu0 %v46_v1  ;;  %s114_s24 = sshll.u32 %s221_s2, 4  ;;  %s115_s24 = int_to_ptr.vmem [resolvable:$true] %s114_s24 }
   0xf   :  { %v78_v4 = vsel %vm49_vm1, %v77_v3, 0.0  ;;  %128 = vmatmul.msk.f32.vlgmr.msra.gmra.mxu0 %vm49_vm1, %v45_v2 }
  0x10   :  { %79 = vadd.xlane.f32.xlu0 %v78_v4 }
  0x83   :  { %v80_v6 = vpop.xlane.xlu0 %79 }
  0x84   :  { %v84_v7 = vadd.f32 %v134_v5, %v80_v6 }
  0x8c   :  { %v74_v8 = vpop.f32.mrf.mxu0 }
  0x8d   :  { %v85_v9 = vadd.f32 %v84_v7, %v74_v8 }
  0x8f   :  { %v86_v10 = vmax.f32 %v85_v9, 1.0 }
  0x91   :  { %135 = vrcp.f32 %v86_v10 }
  0x97   :  { %v136_v11 = vpop.eup %135 }
  0x98   :  { %v88_v12 = vmul.f32 %v136_v11, %v86_v10 }
  0x9a   :  { %v89_v13 = vsub.f32 2.0, %v88_v12 }
  0x9c   :  { %v90_v14 = vmul.f32 %v136_v11, %v89_v13 }
  0x9e   :  { %91 = vadd.xlane.f32.xlu0 %v90_v14 }
 0x111   :  { %v92_v15 = vpop.xlane.xlu0 %91 }
 0x112   :  { %137 = vrcp.f32 %v92_v15  ;;  %v104_v19 = vand.u32 2147483648, %v92_v15  ;;  %v102_v21 = vand.u32 2147483647, %v92_v15  ;;  %vm98_vm3 = vweird.f32 %v92_v15 }
 0x114   :  { %v105_v23 = vor.u32 1.1754944e-38, %v104_v19  ;;  %vm103_vm5 = vcmp.eq.f32.partialorder %v102_v21, 8.507059e+37 }
 0x118   :  { %v138_v16 = vpop.eup %137 }
 0x119   :  { %v94_v17 = vmul.f32 %v138_v16, %v92_v15  ;;  %vm99_vm2 = vweird.f32 %v138_v16 }
 0x11a   :  { %vm100_vm4 = vmor %vm98_vm3, %vm99_vm2 }
 0x11b   :  { %v95_v18 = vsub.f32 1.0, %v94_v17 }
 0x11d   :  { %v96_v20 = vmul.f32 %v138_v16, %v95_v18 }
 0x11f   :  { %v97_v22 = vadd.f32 %v138_v16, %v96_v20 }
 0x121   :  { %v101_v24 = vsel %vm100_vm4, %v138_v16, %v97_v22 }
 0x122   :  { %v106_v25 = vsel %vm103_vm5, %v105_v23, %v101_v24 }
 0x123   :  { %v107_v26 = vmul.f32 %v106_v25, %v90_v14 }
 0x125   :  { %108 = vst [vmem:[#allocation7] sm:$0xff] %v107_v26 }
 0x126   :  { %119 = dma.vmem_to_hbm [thread:$0]  %s115_s24, 128, %s117_s27, [#allocation4]  }
 0x127   :  { %215 = dma.done.wait [#allocation4], 128  }
 0x128   :  { %216 = vsyncadd [#allocation4], 4294967168 }
 0x129   :  { %124 = vsyncpa [#allocation3], 1 }
 0x12a   :  { %125 = vsyncpa [#allocation6], 1 }
 0x12b   :  { %126 = vsyncpa [#allocation4], 1 }

// kernel: tpu_custom_call.1
= control target key start
LH: loop header
LB: loop body
LE: loop exit
PB: predicated region body
PF: predicated region fallthrough
CT: control target
= control target key end

     0   :  { %8 = vsyncpa [#allocation3], 0  ;;  %s254_s0 = inlined_call_operand.hbm [shape: f32[8,10], index: 0, kind: input, shape index: {}]   ;;  %s255_s1 = inlined_call_operand.hbm [shape: f32[10,128], index: 1, kind: input, shape index: {}]   ;;  %s256_s2 = inlined_call_operand.vmem [shape: f32[1,128], index: 2, kind: input, shape index: {}]   ;;  %s257_s3 = inlined_call_operand.hbm [shape: f32[8,128], index: 3, kind: output, shape index: {}]  }
   0x1   :  { %9 = vsyncpa [#allocation6], 0 }
   0x2   :  { %10 = vsyncpa [#allocation4], 0  ;;  %s16_s14 = sshll.u32 %s254_s0, 4  ;;  %s217_s15 = smov [#allocation2]   ;;  %s17_s14 = int_to_ptr.hbm [resolvable:$true] %s16_s14 }
   0x3   :  { %s18_s16 = sshll.u32 %s217_s15, 4  ;;  %s26_s19 = sshll.u32 %s255_s1, 4  ;;  %s19_s16 = int_to_ptr.vmem [resolvable:$true] %s18_s16  ;;  %s27_s19 = int_to_ptr.hbm [resolvable:$true] %s26_s19 }
   0x4   :  { %21 = dma.hbm_to_vmem [thread:$0]  %s17_s14, 128, %s19_s16, [#allocation3]  }
   0x5   :  { %s218_s20 = smov [#allocation5]   ;;  %s219_s22 = smov 128  }
   0x6   :  { %s28_s21 = sshll.u32 %s218_s20, 4  ;;  %s220_s23 = smov 8   ;;  %s29_s21 = int_to_ptr.vmem [resolvable:$true] %s28_s21 }
   0x7   :  { %34 = dma.hbm_to_vmem [thread:$0]  %s27_s19, 256, %s29_s21, [#allocation6], %s219_s22, %s219_s22, %s220_s23  }
   0x8   :  { %211 = dma.done.wait [#allocation3], 128  }
   0x9   :  { %212 = vsyncadd [#allocation3], 4294967168 }
   0xa   :  { %213 = dma.done.wait [#allocation6], 256  }
   0xb   :  { %214 = vsyncadd [#allocation6], 4294967040  ;;  %vm53_vm0 = vcmask 1041408   ;;  %v47_v0 = vld [vmem:[#allocation5 + $0x8] sm:$0x3]  ;;  %v46_v1 = vld [vmem:[#allocation5] sm:$0xff] }
   0xc   :  { %v45_v2 = vld [vmem:[#allocation2] sm:$0xff]  ;;  %127 = vmatpush.msk.msra.mxu0 %vm53_vm0, %v47_v0  ;;  %vm49_vm1 = vcmask 80896   ;;  %s116_s27 = sshll.u32 %s257_s3, 4  ;;  %s117_s27 = int_to_ptr.hbm [resolvable:$true] %s116_s27 }
   0xd   :  { %v77_v3 = vmul.f32 %v45_v2, %v45_v2  ;;  %v134_v5 = vld [vmem:[%s256_s2] ss:$0 sm:$0xff]  ;;  %s221_s2 = smov [#allocation7]  }
   0xe   :  { %72 = vmatpush.msra.mxu0 %v46_v1  ;;  %s114_s24 = sshll.u32 %s221_s2, 4  ;;  %s115_s24 = int_to_ptr.vmem [resolvable:$true] %s114_s24 }
   0xf   :  { %v78_v4 = vsel %vm49_vm1, %v77_v3, 0.0  ;;  %128 = vmatmul.msk.f32.vlgmr.msra.gmra.mxu0 %vm49_vm1, %v45_v2 }
  0x10   :  { %79 = vadd.xlane.f32.xlu0 %v78_v4 }
  0x83   :  { %v80_v6 = vpop.xlane.xlu0 %79 }
  0x84   :  { %v84_v7 = vadd.f32 %v134_v5, %v80_v6 }
  0x8c   :  { %v74_v8 = vpop.f32.mrf.mxu0 }
  0x8d   :  { %v85_v9 = vadd.f32 %v84_v7, %v74_v8 }
  0x8f   :  { %v86_v10 = vmax.f32 %v85_v9, 1.0 }
  0x91   :  { %135 = vrcp.f32 %v86_v10 }
  0x97   :  { %v136_v11 = vpop.eup %135 }
  0x98   :  { %v88_v12 = vmul.f32 %v136_v11, %v86_v10 }
  0x9a   :  { %v89_v13 = vsub.f32 2.0, %v88_v12 }
  0x9c   :  { %v90_v14 = vmul.f32 %v136_v11, %v89_v13 }
  0x9e   :  { %91 = vadd.xlane.f32.xlu0 %v90_v14 }
 0x111   :  { %v92_v15 = vpop.xlane.xlu0 %91 }
 0x112   :  { %137 = vrcp.f32 %v92_v15  ;;  %v104_v19 = vand.u32 2147483648, %v92_v15  ;;  %v102_v21 = vand.u32 2147483647, %v92_v15  ;;  %vm98_vm3 = vweird.f32 %v92_v15 }
 0x114   :  { %v105_v23 = vor.u32 1.1754944e-38, %v104_v19  ;;  %vm103_vm5 = vcmp.eq.f32.partialorder %v102_v21, 8.507059e+37 }
 0x118   :  { %v138_v16 = vpop.eup %137 }
 0x119   :  { %v94_v17 = vmul.f32 %v138_v16, %v92_v15  ;;  %vm99_vm2 = vweird.f32 %v138_v16 }
 0x11a   :  { %vm100_vm4 = vmor %vm98_vm3, %vm99_vm2 }
 0x11b   :  { %v95_v18 = vsub.f32 1.0, %v94_v17 }
 0x11d   :  { %v96_v20 = vmul.f32 %v138_v16, %v95_v18 }
 0x11f   :  { %v97_v22 = vadd.f32 %v138_v16, %v96_v20 }
 0x121   :  { %v101_v24 = vsel %vm100_vm4, %v138_v16, %v97_v22 }
 0x122   :  { %v106_v25 = vsel %vm103_vm5, %v105_v23, %v101_v24 }
 0x123   :  { %v107_v26 = vmul.f32 %v106_v25, %v90_v14 }
 0x125   :  { %108 = vst [vmem:[#allocation7] sm:$0xff] %v107_v26 }
 0x126   :  { %119 = dma.vmem_to_hbm [thread:$0]  %s115_s24, 128, %s117_s27, [#allocation4]  }
 0x127   :  { %215 = dma.done.wait [#allocation4], 128  }
 0x128   :  { %216 = vsyncadd [#allocation4], 4294967168 }
 0x129   :  { %124 = vsyncpa [#allocation3], 1 }
 0x12a   :  { %125 = vsyncpa [#allocation6], 1 }
 0x12b   :  { %126 = vsyncpa [#allocation4], 1 }

</bundles_post_ra>
